<compile_context>
chip_gen: v7x
topology: tpu7x:2x2x1
jax: 0.10.0
libtpu: 0.0.40
codegen_flags: <defaults>
</compile_context>

<pallas_src>
import functools

import jax
import jax.numpy as jnp
import numpy as np
from jax.experimental import pallas as pl
from jax.experimental.pallas import tpu as pltpu


def _layer1_weights(W, L, H):
    """Per-head causal relative-position attention weights, already softmaxed.

    W_h[r, c] = W[r - c, h] for c <= r, -inf above the diagonal;
    returns softmax(W_h, axis=-1) with shape (H, L, L).  Batch independent.
    """
    r = jnp.arange(L)[:, None]
    c = jnp.arange(L)[None, :]
    idx = r - c                                            # (L, L)
    gathered = W[jnp.clip(idx, 0, L - 1), :]               # (L, L, H)
    logits = jnp.transpose(gathered, (2, 0, 1))            # (H, L, L)
    logits = jnp.where((idx >= 0)[None, :, :], logits, -jnp.inf)
    return jax.nn.softmax(logits, axis=-1).astype(jnp.float32)


def _score_matrices(W, A, L, H, S):
    """Fold layer-1 softmax P and the bilinear A into per-position score matrices.

    With xf_b = x[b].reshape(L*S):
        q_b      = Fq   @ xf_b        (H*S,)    q_b[h*S+s']  = sum_m P[h, L-1, m] x[b, m, s']
        k_{b,l}  = Fk_l @ xf_b        (H*S,)    k[h*S+s]     = sum_n P[h, l,   n] x[b, n, s]
        scores[b, l] = q_b^T A k_{b,l} = xf_b^T (Fq^T A Fk_l) xf_b = xf_b^T M_l xf_b
    M_l is batch independent; returned stacked along columns:
        Mbig[:, l*L*S:(l+1)*L*S] = M_l,  shape (L*S, (L-1)*L*S).
    """
    P = _layer1_weights(W, L, H)                           # (H, L, L)
    eye = jnp.eye(S, dtype=jnp.float32)
    Fq = jnp.einsum('hm,st->hsmt', P[:, L - 1, :], eye).reshape(H * S, L * S)
    Fk = jnp.einsum('hln,st->lhsnt', P[:, :L - 1, :], eye).reshape(L - 1, H * S, L * S)
    M = jnp.einsum('ci,cd,ldj->lij', Fq, A.astype(jnp.float32), Fk)   # (L-1, LS, LS)
    return jnp.transpose(M, (1, 0, 2)).reshape(L * S, (L - 1) * L * S)


def _kernel(xf_ref, m_ref, o_ref, *, L, S):
    # xf_ref: (Bt, L*S) rows of x (row-major flatten)   m_ref: (L*S, (L-1)*L*S)
    # o_ref:  (Bt, S)
    LS = L * S
    Xf = xf_ref[...]                                       # (Bt, LS), resident all step
    Mbig = m_ref[...]                                      # shared, batch independent

    # ---- all (L-1) bilinear score forms for the whole block: ONE MXU matmul ----
    Y = jnp.dot(Xf, Mbig, preferred_element_type=jnp.float32)     # (Bt, (L-1)*LS)

    # scores[b, l] = sum_j Y[b, l*LS + j] * Xf[b, j]  -> VPU multiply + lane reduce per l
    cols = []
    for l in range(L - 1):                                 # static, tiny (L-1 = 7)
        z = Y[:, l * LS:(l + 1) * LS] * Xf
        cols.append(jnp.sum(z, axis=-1, keepdims=True))
    scores = jnp.concatenate(cols, axis=-1)                # (Bt, L-1)

    # ---- single batched layer-2 softmax over the whole block ----
    m2 = jnp.max(scores, axis=-1, keepdims=True)
    e2 = jnp.exp(scores - m2)
    denom = jnp.sum(e2, axis=-1, keepdims=True)
    inv = pl.reciprocal(denom, approx=True)                # EUP seed (free slot)
    inv = inv * (2.0 - denom * inv)                        # 2 Newton steps: f32-accurate
    inv = inv * (2.0 - denom * inv)                        # at negligible VPU cost
    p2 = e2 * inv                                          # (Bt, L-1)

    # ---- values are the raw inputs: out[b, s] = sum_{l<L-1} p2[b, l] * x[b, l, s] ----
    out = p2[:, 0:1] * Xf[:, 0:S]
    for l in range(1, L - 1):
        out = out + p2[:, l:l + 1] * Xf[:, l * S:(l + 1) * S]

    o_ref[...] = out                                       # single slab store per step


def _pick_block_b(B):
    """Generation-aware batch blocking.

    At small B the ~0.35us fixed per-step overhead dominates on every generation, so a
    single grid step (block_b = B) is fastest even on v7x.  For large B, block in
    sublane-aligned chunks and keep the grid axis 'parallel' for v7x megacore.
    """
    if B <= 256:
        return B
    for cand in (256, 128, 64, 32, 16, 8):
        if B % cand == 0:
            return cand
    return B


def two_layer_transformer(x, W, A, *, block_b=None):
    B, L, S = x.shape
    H = W.shape[1]
    LS = L * S
    if block_b is None:
        block_b = _pick_block_b(B)
    assert B % block_b == 0, "batch must be divisible by block_b"

    # Batch-independent parameter glue computed once in the wrapper (hoisted layer-1 softmax
    # + q^T A k fold); the kernel only does batch-dependent work.
    Mbig = _score_matrices(W, A, L, H, S)                  # (LS, (L-1)*LS)
    xf = x.astype(jnp.float32).reshape(B, LS)              # free row-major view, lane-dense DMA

    kernel = functools.partial(_kernel, L=L, S=S)

    return pl.pallas_call(
        kernel,
        out_shape=jax.ShapeDtypeStruct((B, S), jnp.float32),
        grid_spec=pltpu.PrefetchScalarGridSpec(
            num_scalar_prefetch=0,
            grid=(B // block_b,),
            in_specs=[
                pl.BlockSpec((block_b, LS), lambda i: (i, 0)),          # x rows for this step
                pl.BlockSpec((LS, (L - 1) * LS), lambda i: (0, 0)),     # shared score matrices
            ],
            out_specs=pl.BlockSpec((block_b, S), lambda i: (i, 0)),     # one slab per step
        ),
        compiler_params=pltpu.CompilerParams(
            dimension_semantics=("parallel",)),
    )(xf, Mbig)


def reference_forward(x, W, A):
    """Pure-JAX mirror of the PyTorch forward, for validation."""
    B, L, S = x.shape
    H = W.shape[1]
    HS = H * S
    P = _layer1_weights(W, L, H)                           # (H, L, L)
    attn = jnp.einsum('hlm,bms->bhls', P, x)               # (B, H, L, S)
    X1_heads = jnp.transpose(attn, (0, 2, 1, 3)).reshape(B, L, HS)
    q = X1_heads[:, -1:, :]                                # (B, 1, HS)
    k = X1_heads[:, :-1, :]                                # (B, L-1, HS)
    W2 = jnp.einsum('bij,jk,blk->bil', q, A, k)            # (B, 1, L-1)
    W2 = jax.nn.softmax(W2, axis=-1)
    X2 = jnp.einsum('bil,bls->bis', W2, x[:, :-1, :])      # (B, 1, S)
    return X2[:, 0, :]


if __name__ == "__main__":
    # module config: vocab_size=8, seq_length=8, num_heads=2, window_length=2
    S, L, H, M = 8, 8, 2, 2
    w_plus, w_minus, a = 2.0, 0.5, 1.5
    B = 16    # single grid step: (16, 64) x block, one matmul, one softmax, one store

    # deterministic parameter init (mirrors TwoLayerTransformer.init)
    W = jnp.full((L, H), w_minus, dtype=jnp.float32)
    W = W.at[jnp.arange(M), jnp.arange(M)].set(w_plus)
    A = a * jnp.eye(H * S, dtype=jnp.float32)

    key = jax.random.PRNGKey(0)
    x = jax.random.normal(key, (B, L, S), dtype=jnp.float32)

    out = two_layer_transformer(x, W, A)
    out = jax.block_until_ready(out)

    ref = reference_forward(x, W, A)
    np.testing.assert_allclose(np.asarray(out), np.asarray(ref), rtol=2e-5, atol=2e-5)

    print("KERNEL_OK")
</pallas_src>

<mosaic_0001>
module attributes {stable_mosaic.version = 11 : i64} {
  func.func @_kernel(%arg0: i32, %arg1: memref<16x64xf32, #tpu.memory_space<vmem>>, %arg2: memref<64x448xf32, #tpu.memory_space<vmem>>, %arg3: memref<16x8xf32, #tpu.memory_space<vmem>>) attributes {dimension_semantics = [#tpu.dimension_semantics<parallel>], iteration_bounds = array<i64: 1>, scalar_prefetch = 0 : i64, scratch_operands = 0 : i64, tpu.core_type = #tpu.core_type<tc>, window_params = [{transform_indices = @transform_0, window_bounds = array<i64: 16, 64>}, {pipeline_mode = #tpu.pipeline_mode<synchronous>, transform_indices = @transform_1, window_bounds = array<i64: 64, 448>}, {transform_indices = @transform_2, window_bounds = array<i64: 16, 8>}]} {
    %c0 = arith.constant 0 : index
    %c0_0 = arith.constant 0 : index
    %0 = vector.load %arg1[%c0, %c0_0] : memref<16x64xf32, #tpu.memory_space<vmem>>, vector<16x64xf32>
    %c0_1 = arith.constant 0 : index
    %c0_2 = arith.constant 0 : index
    %1 = vector.load %arg2[%c0_1, %c0_2] : memref<64x448xf32, #tpu.memory_space<vmem>>, vector<64x448xf32>
    %cst = arith.constant dense<0.000000e+00> : vector<16x448xf32>
    %2 = tpu.matmul %0, %1, %cst {dimension_numbers = #tpu.dot_dimension_numbers<[1], [0], [0], [1], [0, 0, 1, 1], [], []>} : vector<16x64xf32>, vector<64x448xf32>, vector<16x448xf32> -> vector<16x448xf32>
    %3 = vector.extract_strided_slice %2 {offsets = [0, 0], sizes = [16, 64], strides = [1, 1]} : vector<16x448xf32> to vector<16x64xf32>
    %4 = arith.mulf %3, %0 : vector<16x64xf32>
    %cst_3 = arith.constant dense<0.000000e+00> : vector<16xf32>
    %5 = vector.multi_reduction <add>, %4, %cst_3 [1] : vector<16x64xf32> to vector<16xf32>
    %6 = vector.shape_cast %5 : vector<16xf32> to vector<16x1xf32>
    %7 = vector.extract_strided_slice %2 {offsets = [0, 64], sizes = [16, 64], strides = [1, 1]} : vector<16x448xf32> to vector<16x64xf32>
    %8 = arith.mulf %7, %0 : vector<16x64xf32>
    %cst_4 = arith.constant dense<0.000000e+00> : vector<16xf32>
    %9 = vector.multi_reduction <add>, %8, %cst_4 [1] : vector<16x64xf32> to vector<16xf32>
    %10 = vector.shape_cast %9 : vector<16xf32> to vector<16x1xf32>
    %11 = vector.extract_strided_slice %2 {offsets = [0, 128], sizes = [16, 64], strides = [1, 1]} : vector<16x448xf32> to vector<16x64xf32>
    %12 = arith.mulf %11, %0 : vector<16x64xf32>
    %cst_5 = arith.constant dense<0.000000e+00> : vector<16xf32>
    %13 = vector.multi_reduction <add>, %12, %cst_5 [1] : vector<16x64xf32> to vector<16xf32>
    %14 = vector.shape_cast %13 : vector<16xf32> to vector<16x1xf32>
    %15 = vector.extract_strided_slice %2 {offsets = [0, 192], sizes = [16, 64], strides = [1, 1]} : vector<16x448xf32> to vector<16x64xf32>
    %16 = arith.mulf %15, %0 : vector<16x64xf32>
    %cst_6 = arith.constant dense<0.000000e+00> : vector<16xf32>
    %17 = vector.multi_reduction <add>, %16, %cst_6 [1] : vector<16x64xf32> to vector<16xf32>
    %18 = vector.shape_cast %17 : vector<16xf32> to vector<16x1xf32>
    %19 = vector.extract_strided_slice %2 {offsets = [0, 256], sizes = [16, 64], strides = [1, 1]} : vector<16x448xf32> to vector<16x64xf32>
    %20 = arith.mulf %19, %0 : vector<16x64xf32>
    %cst_7 = arith.constant dense<0.000000e+00> : vector<16xf32>
    %21 = vector.multi_reduction <add>, %20, %cst_7 [1] : vector<16x64xf32> to vector<16xf32>
    %22 = vector.shape_cast %21 : vector<16xf32> to vector<16x1xf32>
    %23 = vector.extract_strided_slice %2 {offsets = [0, 320], sizes = [16, 64], strides = [1, 1]} : vector<16x448xf32> to vector<16x64xf32>
    %24 = arith.mulf %23, %0 : vector<16x64xf32>
    %cst_8 = arith.constant dense<0.000000e+00> : vector<16xf32>
    %25 = vector.multi_reduction <add>, %24, %cst_8 [1] : vector<16x64xf32> to vector<16xf32>
    %26 = vector.shape_cast %25 : vector<16xf32> to vector<16x1xf32>
    %27 = vector.extract_strided_slice %2 {offsets = [0, 384], sizes = [16, 64], strides = [1, 1]} : vector<16x448xf32> to vector<16x64xf32>
    %28 = arith.mulf %27, %0 : vector<16x64xf32>
    %cst_9 = arith.constant dense<0.000000e+00> : vector<16xf32>
    %29 = vector.multi_reduction <add>, %28, %cst_9 [1] : vector<16x64xf32> to vector<16xf32>
    %30 = vector.shape_cast %29 : vector<16xf32> to vector<16x1xf32>
    %31 = tpu.concatenate %6, %10, %14, %18, %22, %26, %30 in 1 : vector<16x1xf32>, vector<16x1xf32>, vector<16x1xf32>, vector<16x1xf32>, vector<16x1xf32>, vector<16x1xf32>, vector<16x1xf32> -> vector<16x7xf32>
    %cst_10 = arith.constant dense<0xFF800000> : vector<16xf32>
    %32 = vector.multi_reduction <maximumf>, %31, %cst_10 [1] : vector<16x7xf32> to vector<16xf32>
    %33 = vector.shape_cast %32 : vector<16xf32> to vector<16x1xf32>
    %34 = vector.broadcast %33 : vector<16x1xf32> to vector<16x7xf32>
    %35 = arith.subf %31, %34 : vector<16x7xf32>
    %36 = math.exp %35 : vector<16x7xf32>
    %cst_11 = arith.constant dense<0.000000e+00> : vector<16xf32>
    %37 = vector.multi_reduction <add>, %36, %cst_11 [1] : vector<16x7xf32> to vector<16xf32>
    %38 = vector.shape_cast %37 : vector<16xf32> to vector<16x1xf32>
    %39 = tpu.reciprocal %38 {approx = true} : vector<16x1xf32> -> vector<16x1xf32>
    %40 = arith.mulf %38, %39 : vector<16x1xf32>
    %cst_12 = arith.constant 2.000000e+00 : f32
    %41 = vector.broadcast %cst_12 : f32 to vector<16x1xf32>
    %42 = arith.subf %41, %40 : vector<16x1xf32>
    %43 = arith.mulf %39, %42 : vector<16x1xf32>
    %44 = arith.mulf %38, %43 : vector<16x1xf32>
    %cst_13 = arith.constant 2.000000e+00 : f32
    %45 = vector.broadcast %cst_13 : f32 to vector<16x1xf32>
    %46 = arith.subf %45, %44 : vector<16x1xf32>
    %47 = arith.mulf %43, %46 : vector<16x1xf32>
    %48 = vector.broadcast %47 : vector<16x1xf32> to vector<16x7xf32>
    %49 = arith.mulf %36, %48 : vector<16x7xf32>
    %50 = vector.extract_strided_slice %49 {offsets = [0, 0], sizes = [16, 1], strides = [1, 1]} : vector<16x7xf32> to vector<16x1xf32>
    %51 = vector.extract_strided_slice %0 {offsets = [0, 0], sizes = [16, 8], strides = [1, 1]} : vector<16x64xf32> to vector<16x8xf32>
    %52 = vector.broadcast %50 : vector<16x1xf32> to vector<16x8xf32>
    %53 = arith.mulf %52, %51 : vector<16x8xf32>
    %54 = vector.extract_strided_slice %49 {offsets = [0, 1], sizes = [16, 1], strides = [1, 1]} : vector<16x7xf32> to vector<16x1xf32>
    %55 = vector.extract_strided_slice %0 {offsets = [0, 8], sizes = [16, 8], strides = [1, 1]} : vector<16x64xf32> to vector<16x8xf32>
    %56 = vector.broadcast %54 : vector<16x1xf32> to vector<16x8xf32>
    %57 = arith.mulf %56, %55 : vector<16x8xf32>
    %58 = arith.addf %53, %57 : vector<16x8xf32>
    %59 = vector.extract_strided_slice %49 {offsets = [0, 2], sizes = [16, 1], strides = [1, 1]} : vector<16x7xf32> to vector<16x1xf32>
    %60 = vector.extract_strided_slice %0 {offsets = [0, 16], sizes = [16, 8], strides = [1, 1]} : vector<16x64xf32> to vector<16x8xf32>
    %61 = vector.broadcast %59 : vector<16x1xf32> to vector<16x8xf32>
    %62 = arith.mulf %61, %60 : vector<16x8xf32>
    %63 = arith.addf %58, %62 : vector<16x8xf32>
    %64 = vector.extract_strided_slice %49 {offsets = [0, 3], sizes = [16, 1], strides = [1, 1]} : vector<16x7xf32> to vector<16x1xf32>
    %65 = vector.extract_strided_slice %0 {offsets = [0, 24], sizes = [16, 8], strides = [1, 1]} : vector<16x64xf32> to vector<16x8xf32>
    %66 = vector.broadcast %64 : vector<16x1xf32> to vector<16x8xf32>
    %67 = arith.mulf %66, %65 : vector<16x8xf32>
    %68 = arith.addf %63, %67 : vector<16x8xf32>
    %69 = vector.extract_strided_slice %49 {offsets = [0, 4], sizes = [16, 1], strides = [1, 1]} : vector<16x7xf32> to vector<16x1xf32>
    %70 = vector.extract_strided_slice %0 {offsets = [0, 32], sizes = [16, 8], strides = [1, 1]} : vector<16x64xf32> to vector<16x8xf32>
    %71 = vector.broadcast %69 : vector<16x1xf32> to vector<16x8xf32>
    %72 = arith.mulf %71, %70 : vector<16x8xf32>
    %73 = arith.addf %68, %72 : vector<16x8xf32>
    %74 = vector.extract_strided_slice %49 {offsets = [0, 5], sizes = [16, 1], strides = [1, 1]} : vector<16x7xf32> to vector<16x1xf32>
    %75 = vector.extract_strided_slice %0 {offsets = [0, 40], sizes = [16, 8], strides = [1, 1]} : vector<16x64xf32> to vector<16x8xf32>
    %76 = vector.broadcast %74 : vector<16x1xf32> to vector<16x8xf32>
    %77 = arith.mulf %76, %75 : vector<16x8xf32>
    %78 = arith.addf %73, %77 : vector<16x8xf32>
    %79 = vector.extract_strided_slice %49 {offsets = [0, 6], sizes = [16, 1], strides = [1, 1]} : vector<16x7xf32> to vector<16x1xf32>
    %80 = vector.extract_strided_slice %0 {offsets = [0, 48], sizes = [16, 8], strides = [1, 1]} : vector<16x64xf32> to vector<16x8xf32>
    %81 = vector.broadcast %79 : vector<16x1xf32> to vector<16x8xf32>
    %82 = arith.mulf %81, %80 : vector<16x8xf32>
    %83 = arith.addf %78, %82 : vector<16x8xf32>
    %c0_14 = arith.constant 0 : index
    %c0_15 = arith.constant 0 : index
    %84 = vector.load %arg3[%c0_14, %c0_15] : memref<16x8xf32, #tpu.memory_space<vmem>>, vector<16x8xf32>
    tpu.vector_store %arg3[%c0_14, %c0_15], %83 {strides = array<i32>} : memref<16x8xf32, #tpu.memory_space<vmem>>, vector<16x8xf32>,
    return
  }
  func.func @transform_0(%arg0: i32) -> (i32, i32) {
    %c0_i32 = arith.constant 0 : i32
    %c0_i32_0 = arith.constant 0 : i32
    return %arg0, %c0_i32 : i32, i32
  }
  func.func @transform_1(%arg0: i32) -> (i32, i32) {
    %c0_i32 = arith.constant 0 : i32
    %c0_i32_0 = arith.constant 0 : i32
    %c0_i32_1 = arith.constant 0 : i32
    return %c0_i32, %c0_i32_0 : i32, i32
  }
  func.func @transform_2(%arg0: i32) -> (i32, i32) {
    %c0_i32 = arith.constant 0 : i32
    %c0_i32_0 = arith.constant 0 : i32
    return %arg0, %c0_i32 : i32, i32
  }
}

</mosaic_0001>

<bundles_post_ra>
// kernel: tpu_custom_call.1
= control target key start
LH: loop header
LB: loop body
LE: loop exit
PB: predicated region body
PF: predicated region fallthrough
CT: control target
= control target key end

     0   :  { %7 = vsyncpa [#allocation3], 0  ;;  %s783_s0 = inlined_call_operand.hbm [shape: f32[16,64], index: 0, kind: input, shape index: {}]   ;;  %s784_s1 = inlined_call_operand.hbm [shape: f32[64,448], index: 1, kind: input, shape index: {}]   ;;  %s785_s2 = inlined_call_operand.vmem [shape: f32[16,8], index: 2, kind: output, shape index: {}]  }
   0x1   :  { %8 = vsyncpa [#allocation5], 0  ;;  %s641_s9 = smov [#allocation2]   ;;  %s593_s13 = scalar_lea.hbm %s783_s0, 256 }
   0x2   :  { %s14_s10 = sshll.u32 %s641_s9, 4  ;;  %p594_p0 = scmp.ne.s32.totalorder %s783_s0, %s593_s13  ;;  %s15_s10 = int_to_ptr.vmem [resolvable:$true] %s14_s10 }
   0x3   :  { %p597_p1 = scmp.lt.u32.totalorder %s593_s13, %s783_s0 }
   0x5   :  { %p599_p2 = pnand %p597_p1, %p594_p0 }
   0x7   :  { %602 = shalt.err (!%p599_p2)
}
   0x8   :  { %s603_s18 = scalar_lea.vmem %s15_s10, 256  ;;  %p608_p4 = scmp.lt.s32.totalorder %s15_s10, %s15_s10 }
   0x9   :  { %p604_p3 = scmp.ne.s32.totalorder %s15_s10, %s603_s18  ;;  %p609_p5 = scmp.lt.s32.totalorder %s603_s18, %s603_s18 }
   0xb   :  { %p610_p6 = por %p609_p5, %p608_p4 }
   0xd   :  { %p611_p7 = pnand %p610_p6, %p604_p3 }
   0xf   :  { %614 = shalt.err (!%p611_p7)
}
  0x10   :  { %s642_s19 = smov 128   ;;  %s643_s20 = smov 8  }
  0x11   :  { %20 = dma.hbm_to_vmem [thread:$0]  %s783_s0, 256, %s15_s10, [#allocation3], %s642_s19, %s642_s19, %s643_s20  }
  0x12   :  { %s644_s23 = smov [#allocation4]   ;;  %s615_s27 = scalar_lea.hbm %s784_s1, 4096 }
  0x13   :  { %s26_s24 = sshll.u32 %s644_s23, 4  ;;  %p616_p8 = scmp.ne.s32.totalorder %s784_s1, %s615_s27  ;;  %s27_s24 = int_to_ptr.vmem [resolvable:$true] %s26_s24 }
  0x14   :  { %p619_p9 = scmp.lt.u32.totalorder %s615_s27, %s784_s1 }
  0x16   :  { %p621_p10 = pnand %p619_p9, %p616_p8 }
  0x18   :  { %624 = shalt.err (!%p621_p10)
}
  0x19   :  { %s625_s4 = scalar_lea.vmem %s27_s24, 4096  ;;  %p630_p12 = scmp.lt.s32.totalorder %s27_s24, %s27_s24 }
  0x1a   :  { %p626_p11 = scmp.ne.s32.totalorder %s27_s24, %s625_s4  ;;  %p631_p13 = scmp.lt.s32.totalorder %s625_s4, %s625_s4 }
  0x1c   :  { %p632_p0 = por %p631_p13, %p630_p12 }
  0x1e   :  { %p633_p1 = pnand %p632_p0, %p626_p11 }
  0x20   :  { %636 = shalt.err (!%p633_p1)
}
  0x21   :  { %s645_s0 = smov 512   ;;  %s646_s5 = smov 32  }
  0x22   :  { %32 = dma.hbm_to_vmem [thread:$0]  %s784_s1, 4096, %s27_s24, [#allocation5], %s645_s0, %s645_s0, %s646_s5  }
  0x23   :  { %637 = dma.done.wait [#allocation3], 256  }
  0x24   :  { %638 = vsyncadd [#allocation3], 4294967040 }
  0x25   :  { %639 = dma.done.wait [#allocation5], 4096  }
  0x26   :  { %640 = vsyncadd [#allocation5], 4294963200  ;;  %v647_v0 = vmov 0.0   ;;  %v42_v1 = vld [vmem:[#allocation4 + $0x8] sm:$0xff]  ;;  %v41_v3 = vld [vmem:[#allocation4] sm:$0xff]  ;;  %s648_s1 = smov 64  }
  0x27   :  { %144 = vmatprep.mubr.f32.mxu0 %v647_v0  ;;  %221 = vmatprep.mubr.f32.mxu1 %v647_v0  ;;  %v46_v2 = vld [vmem:[#allocation4 + $0x28] sm:$0xff]  ;;  %v45_v5 = vld [vmem:[#allocation4 + $0x20] sm:$0xff]  ;;  %v44_v6 = vld [vmem:[#allocation4 + $0x18] sm:$0xff]  ;;  %vm73_vm0 = vcmask 523264   ;;  %vm320_vm1 = vcmask 7168   ;;  %vm323_vm2 = vcmask 15360  }
  0x28   :  { %v518_v4 = vpack.c.bf16 %v46_v2, %v42_v1  ;;  %v48_v7 = vld [vmem:[#allocation4 + $0x38] sm:$0xff]  ;;  %v520_v8 = vpack.c.bf16 %v45_v5, %v41_v3  ;;  %v43_v10 = vld [vmem:[#allocation4 + $0x10] sm:$0xff]  ;;  %v50_v12 = vld [vmem:[#allocation4 + $0x48] sm:$0xff]  ;;  %vm326_vm3 = vcmask 23552   ;;  %vm329_vm4 = vcmask 31744   ;;  %s656_s8 = smov 120  }
  0x29   :  { %v534_v9 = vpack.c.bf16 %v48_v7, %v44_v6  ;;  %v47_v11 = vld [vmem:[#allocation4 + $0x30] sm:$0xff]  ;;  %v54_v14 = vld [vmem:[#allocation4 + $0x68] sm:$0xff]  ;;  %v49_v15 = vld [vmem:[#allocation4 + $0x40] sm:$0xff]  ;;  %vm332_vm5 = vcmask 39936   ;;  %vm335_vm6 = vcmask 48128   ;;  %vm338_vm7 = vcmask 56320  }
  0x2a   :  { %519 = vmatprep.subr.bf16.mxu0 %v518_v4  ;;  %v536_v13 = vpack.c.bf16 %v47_v11, %v43_v10  ;;  %v53_v16 = vld [vmem:[#allocation4 + $0x60] sm:$0xff]  ;;  %v522_v17 = vpack.c.bf16 %v54_v14, %v50_v12  ;;  %v52_v19 = vld [vmem:[#allocation4 + $0x58] sm:$0xff]  ;;  %v51_v21 = vld [vmem:[#allocation4 + $0x50] sm:$0xff]  ;;  %s657_s9 = smov 112   ;;  %s658_s10 = smov 104   ;;  %vm505_vm8 = vcmask 64512  }
  0x2b   :  { %521 = vmatpush1.bf16.msra.mxu0 %v520_v8  ;;  %535 = vmatprep.subr.bf16.mxu1 %v534_v9  ;;  %v524_v18 = vpack.c.bf16 %v53_v16, %v49_v15  ;;  %v56_v20 = vld [vmem:[#allocation4 + $0x78] sm:$0xff]  ;;  %v55_v23 = vld [vmem:[#allocation4 + $0x70] sm:$0xff]  ;;  %v58_v24 = vld [vmem:[#allocation4 + $0x88] sm:$0xff]  ;;  %s659_s11 = smov 96   ;;  %s660_s12 = smov 88  }
  0x2c   :  { %537 = vmatpush1.bf16.msra.mxu1 %v536_v13  ;;  %v538_v22 = vpack.c.bf16 %v56_v20, %v52_v19  ;;  %v62_v25 = vld [vmem:[#allocation4 + $0xa8] sm:$0xff]  ;;  %523 = vmatprep.subr.bf16.mxu0 %v522_v17  ;;  %v540_v26 = vpack.c.bf16 %v55_v23, %v51_v21  ;;  %v57_v28 = vld [vmem:[#allocation4 + $0x80] sm:$0xff]  ;;  %v60_v30 = vld [vmem:[#allocation4 + $0x98] sm:$0xff]  ;;  %s661_s13 = smov 80  }
  0x2d   :  { %v526_v27 = vpack.c.bf16 %v62_v25, %v58_v24  ;;  %v61_v29 = vld [vmem:[#allocation4 + $0xa0] sm:$0xff]  ;;  %v64_v31 = vld [vmem:[#allocation4 + $0xb8] sm:$0xff]  ;;  %v59_v32 = vld [vmem:[#allocation4 + $0x90] sm:$0xff] }
  0x2e   :  { %539 = vmatprep.subr.bf16.mxu1 %v538_v22  ;;  %v63_v33 = vld [vmem:[#allocation4 + $0xb0] sm:$0xff]  ;;  %v528_v34 = vpack.c.bf16 %v61_v29, %v57_v28  ;;  %v542_v35 = vpack.c.bf16 %v64_v31, %v60_v30  ;;  %v66_v36 = vld [vmem:[#allocation4 + $0xc8] sm:$0xff]  ;;  %v65_v38 = vld [vmem:[#allocation4 + $0xc0] sm:$0xff] }
  0x2f   :  { %525 = vmatpush1.bf16.msra.mxu0 %v524_v18  ;;  %v70_v37 = vld [vmem:[#allocation4 + $0xe8] sm:$0xff]  ;;  %v544_v39 = vpack.c.bf16 %v63_v33, %v59_v32  ;;  %v69_v41 = vld [vmem:[#allocation4 + $0xe0] sm:$0xff]  ;;  %v68_v42 = vld [vmem:[#allocation4 + $0xd8] sm:$0xff] }
  0x30   :  { %541 = vmatpush1.bf16.msra.mxu1 %v540_v26  ;;  %527 = vmatprep.subr.bf16.mxu0 %v526_v27  ;;  %v530_v40 = vpack.c.bf16 %v70_v37, %v66_v36  ;;  %v72_v43 = vld [vmem:[#allocation4 + $0xf8] sm:$0xff]  ;;  %v67_v45 = vld [vmem:[#allocation4 + $0xd0] sm:$0xff]  ;;  %v532_v48 = vpack.c.bf16 %v69_v41, %v65_v38 }
  0x31   :  { %543 = vmatprep.subr.bf16.mxu1 %v542_v35  ;;  %v546_v44 = vpack.c.bf16 %v72_v43, %v68_v42  ;;  %v71_v46 = vld [vmem:[#allocation4 + $0xf0] sm:$0xff]  ;;  %v707_v50 = vld [vmem:[#allocation2 + $0x8] sm:$0xff] }
  0x32   :  { %v703_v47 = vld [vmem:[#allocation2] sm:$0xff]  ;;  %v548_v49 = vpack.c.bf16 %v71_v46, %v67_v45 }
  0x33   :  { %242 = vrot.lane.b32.xlu0 %v703_v47, %s648_s1  ;;  %529 = vmatpush1.bf16.msra.mxu0 %v528_v34 }
  0x34   :  { %545 = vmatpush1.bf16.msra.mxu1 %v544_v39  ;;  %531 = vmatprep.subr.bf16.mxu0 %v530_v40 }
  0x35   :  { %547 = vmatprep.subr.bf16.mxu1 %v546_v44 }
  0x37   :  { %244 = vrot.lane.b32.xlu0 %v707_v50, %s648_s1  ;;  %533 = vmatpush1.bf16.msra.mxu0 %v532_v48 }
  0x38   :  { %549 = vmatpush1.bf16.msra.mxu1 %v548_v49 }
  0x3a   :  { %514 = vmatmul.mubr.msk.f32.vlgmr.msra.gmra.mrb[0].mxu0 %vm73_vm0, %v703_v47 }
  0x3b   :  { %516 = vmatmul.mubr.msk.f32.vlgmr.msra.gmra.mrb[0].mxu1 %vm73_vm0, %v703_v47  ;;  %150 = vmatprep.mubr.f32.mxu0 %v647_v0 }
  0x3c   :  { %227 = vmatprep.mubr.f32.mxu1 %v647_v0 }
  0x3e   :  { %515 = vmatmul.mubr.msk.f32.gmra.mrb[2].mxu0 %vm73_vm0, %v707_v50 }
  0x3f   :  { %517 = vmatmul.mubr.msk.f32.gmra.mrb[2].mxu1 %vm73_vm0, %v707_v50 }
  0xa5   :  { %v243_v51 = vpop.permute.xlu0 %242 }
  0xa9   :  { %v245_v57 = vpop.permute.xlu0 %244 }
 0x10d   :  { %v146_v52 = vpop.f32.mrb[0].mxu0 }
 0x10e   :  { %v148_v53 = vpop.f32.mrb[1].mxu0  ;;  %v223_v54 = vpop.f32.mrb[0].mxu1  ;;  %v248_v55 = vmul.f32 %v243_v51, %v146_v52  ;;  %v234_v3 = vmul.f32 %v146_v52, %v703_v47 }
 0x10f   :  { %v272_v56 = vmul.f32 %v243_v51, %v148_v53  ;;  %v225_v58 = vpop.f32.mrb[1].mxu1  ;;  %v296_v63 = vmul.f32 %v243_v51, %v223_v54  ;;  %v264_v8 = vmul.f32 %v148_v53, %v703_v47  ;;  %v288_v10 = vmul.f32 %v223_v54, %v703_v47 }
 0x110   :  { %252 = vrot.lane.b32.xlu1 %v248_v55, %s648_s1  ;;  %v236_v5 = vsel %vm73_vm0, %v234_v3, 0.0  ;;  %v312_v23 = vmul.f32 %v225_v58, %v703_v47 }
 0x111   :  { %276 = vrot.lane.b32.xlu0 %v272_v56, %s648_s1  ;;  %v152_v59 = vpop.f32.mrb[2].mxu0  ;;  %v266_v11 = vsel %vm73_vm0, %v264_v8, 0.0  ;;  %v290_v13 = vsel %vm73_vm0, %v288_v10, 0.0  ;;  %v650_v8 = vmov 0  }
 0x112   :  { %v249_v60 = vmul.f32 %v245_v57, %v152_v59  ;;  %v154_v61 = vpop.f32.mrb[3].mxu0  ;;  %v229_v62 = vpop.f32.mrb[2].mxu1  ;;  %v235_v12 = vmul.f32 %v152_v59, %v707_v50  ;;  %v314_v27 = vsel %vm73_vm0, %v312_v23, 0.0  ;;  %571 = vset.pattern.permute.xlu1 %v650_v8 }
 0x113   :  { %v231_v0 = vpop.f32.mrb[3].mxu1  ;;  %v273_v1 = vmul.f32 %v245_v57, %v154_v61  ;;  %v297_v2 = vmul.f32 %v245_v57, %v229_v62  ;;  %v289_v4 = vmul.f32 %v229_v62, %v707_v50  ;;  %v265_v6 = vmul.f32 %v154_v61, %v707_v50 }
 0x114   :  { %254 = vrot.lane.b32.xlu1 %v249_v60, %s648_s1  ;;  %v239_v14 = vsel %vm73_vm0, %v235_v12, 0.0  ;;  %v313_v29 = vmul.f32 %v231_v0, %v707_v50 }
 0x115   :  { %300 = vrot.lane.b32.xlu0 %v296_v63, %s648_s1  ;;  %v293_v7 = vsel %vm73_vm0, %v289_v4, 0.0  ;;  %v269_v9 = vsel %vm73_vm0, %v265_v6, 0.0 }
 0x116   :  { %v317_v30 = vsel %vm73_vm0, %v313_v29, 0.0  ;;  %v653_v29 = vmov 3  }
 0x118   :  { %278 = vrot.lane.b32.xlu1 %v273_v1, %s648_s1 }
 0x11c   :  { %302 = vrot.lane.b32.xlu1 %v297_v2, %s648_s1 }
 0x134   :  { %237 = vadd.xlane.f32.xlu0 %v236_v5 }
 0x138   :  { %294 = vadd.xlane.f32.xlu0 %v293_v7  ;;  %v649_v7 = vmov 1  }
 0x139   :  { %572 = vset.pattern.permute.xlu0 %v649_v7 }
 0x13c   :  { %270 = vadd.xlane.f32.xlu0 %v269_v9 }
 0x140   :  { %267 = vadd.xlane.f32.xlu1 %v266_v11 }
 0x144   :  { %291 = vadd.xlane.f32.xlu1 %v290_v13 }
 0x148   :  { %240 = vadd.xlane.f32.xlu1 %v239_v14 }
 0x182   :  { %v253_v15 = vpop.permute.xlu1 %252 }
 0x183   :  { %v277_v16 = vpop.permute.xlu0 %276  ;;  %v258_v17 = vsel %vm73_vm0, %v253_v15, 0.0 }
 0x184   :  { %259 = vadd.xlane.f32.xlu0 %v258_v17  ;;  %v282_v24 = vsel %vm73_vm0, %v277_v16, 0.0 }
 0x186   :  { %v255_v18 = vpop.permute.xlu1 %254 }
 0x187   :  { %v301_v19 = vpop.permute.xlu0 %300  ;;  %v261_v20 = vsel %vm73_vm0, %v255_v18, 0.0 }
 0x188   :  { %262 = vadd.xlane.f32.xlu0 %v261_v20  ;;  %v306_v21 = vsel %vm73_vm0, %v301_v19, 0.0 }
 0x189   :  { %307 = vadd.xlane.f32.xlu1 %v306_v21 }
 0x18a   :  { %v279_v22 = vpop.permute.xlu1 %278 }
 0x18b   :  { %v285_v28 = vsel %vm73_vm0, %v279_v22, 0.0 }
 0x18d   :  { %283 = vadd.xlane.f32.xlu1 %v282_v24 }
 0x18e   :  { %v303_v25 = vpop.permute.xlu1 %302 }
 0x18f   :  { %v309_v26 = vsel %vm73_vm0, %v303_v25, 0.0 }
 0x190   :  { %310 = vadd.xlane.f32.xlu0 %v309_v26  ;;  %v651_v26 = vmov 2  }
 0x191   :  { %315 = vadd.xlane.f32.xlu1 %v314_v27  ;;  %v652_v27 = vmov 5  }
 0x194   :  { %286 = vadd.xlane.f32.xlu0 %v285_v28 }
 0x198   :  { %318 = vadd.xlane.f32.xlu0 %v317_v30  ;;  %v654_v30 = vmov 4  }
 0x1c1   :  { %v238_v31 = vpop.xlane.xlu0 %237 }
 0x1c5   :  { %v295_v33 = vpop.xlane.xlu0 %294 }
 0x1c9   :  { %v271_v35 = vpop.xlane.xlu0 %270 }
 0x1cd   :  { %v268_v32 = vpop.xlane.xlu1 %267 }
 0x1d1   :  { %v292_v34 = vpop.xlane.xlu1 %291 }
 0x1d5   :  { %v241_v36 = vpop.xlane.xlu1 %240 }
 0x211   :  { %v260_v37 = vpop.xlane.xlu0 %259 }
 0x212   :  { %v321_v39 = vsel %vm320_vm1, %v238_v31, %v260_v37  ;;  %v655_v31 = vmov 6  }
 0x213   :  { %v324_v42 = vsel %vm323_vm2, %v321_v39, %v268_v32 }
 0x215   :  { %v263_v40 = vpop.xlane.xlu0 %262 }
 0x216   :  { %v308_v38 = vpop.xlane.xlu1 %307  ;;  %v322_v48 = vsel %vm320_vm1, %v241_v36, %v263_v40 }
 0x217   :  { %v325_v53 = vsel %vm323_vm2, %v322_v48, %v271_v35 }
 0x21a   :  { %v284_v41 = vpop.xlane.xlu1 %283 }
 0x21b   :  { %v327_v43 = vsel %vm326_vm3, %v324_v42, %v284_v41 }
 0x21c   :  { %v330_v44 = vsel %vm329_vm4, %v327_v43, %v292_v34 }
 0x21d   :  { %v311_v45 = vpop.xlane.xlu0 %310  ;;  %v333_v46 = vsel %vm332_vm5, %v330_v44, %v308_v38 }
 0x21e   :  { %v316_v49 = vpop.xlane.xlu1 %315 }
 0x21f   :  { %v336_v51 = vsel %vm335_vm6, %v333_v46, %v316_v49 }
 0x220   :  { %v339_v52 = vsel %vm338_vm7, %v336_v51, -inf }
 0x221   :  { %340 = vmax.xlane.f32.xlu1 %v339_v52  ;;  %v287_v54 = vpop.xlane.xlu0 %286 }
 0x222   :  { %v328_v55 = vsel %vm326_vm3, %v325_v53, %v287_v54 }
 0x223   :  { %v331_v56 = vsel %vm329_vm4, %v328_v55, %v295_v33 }
 0x224   :  { %v334_v57 = vsel %vm332_vm5, %v331_v56, %v311_v45 }
 0x225   :  { %v319_v58 = vpop.xlane.xlu0 %318 }
 0x226   :  { %v337_v59 = vsel %vm335_vm6, %v334_v57, %v319_v58 }
 0x227   :  { %v342_v60 = vsel %vm338_vm7, %v337_v59, -inf }
 0x228   :  { %343 = vmax.xlane.f32.xlu0 %v342_v60 }
 0x2ae   :  { %v341_v61 = vpop.xlane.xlu1 %340 }
 0x2af   :  { %v345_v62 = vsub.f32 %v336_v51, %v341_v61 }
 0x2b1   :  { %v347_v63 = vmul.f32 1.442695, %v345_v62 }
 0x2b3   :  { %585 = vpow2.f32 %v347_v63 }
 0x2b5   :  { %v344_v0 = vpop.xlane.xlu0 %343 }
 0x2b6   :  { %v346_v1 = vsub.f32 %v337_v59, %v344_v0 }
 0x2b8   :  { %v349_v2 = vmul.f32 1.442695, %v346_v1 }
 0x2ba   :  { %587 = vpow2.f32 %v349_v2 }
 0x2bd   :  { %v586_v3 = vpop.eup %585 }
 0x2be   :  { %v351_v4 = vsel %vm338_vm7, %v586_v3, 0.0 }
 0x2bf   :  { %352 = vadd.xlane.f32.xlu1 %v351_v4 }
 0x2c4   :  { %v588_v5 = vpop.eup %587 }
 0x2c5   :  { %v354_v6 = vsel %vm338_vm7, %v588_v5, 0.0 }
 0x2c6   :  { %355 = vadd.xlane.f32.xlu0 %v354_v6 }
 0x34c   :  { %v353_v9 = vpop.xlane.xlu1 %352 }
 0x34d   :  { %589 = vrcp.f32 %v353_v9 }
 0x353   :  { %v356_v10 = vpop.xlane.xlu0 %355 }
 0x354   :  { %591 = vrcp.f32 %v356_v10 }
 0x357   :  { %v590_v11 = vpop.eup %589 }
 0x358   :  { %v359_v12 = vmul.f32 %v590_v11, %v353_v9 }
 0x35a   :  { %v361_v13 = vsub.f32 2.0, %v359_v12 }
 0x35c   :  { %v363_v14 = vmul.f32 %v590_v11, %v361_v13 }
 0x35e   :  { %v592_v15 = vpop.eup %591  ;;  %v365_v16 = vmul.f32 %v363_v14, %v353_v9 }
 0x35f   :  { %v360_v17 = vmul.f32 %v592_v15, %v356_v10 }
 0x360   :  { %v367_v18 = vsub.f32 2.0, %v365_v16 }
 0x361   :  { %v362_v19 = vsub.f32 2.0, %v360_v17 }
 0x362   :  { %v369_v20 = vmul.f32 %v367_v18, %v363_v14 }
 0x363   :  { %v364_v21 = vmul.f32 %v592_v15, %v362_v19 }
 0x364   :  { %v371_v22 = vmul.f32 %v586_v3, %v369_v20 }
 0x365   :  { %v366_v23 = vmul.f32 %v364_v21, %v356_v10 }
 0x366   :  { %375 = vperm.xlu1 %571, %v371_v22   ;;  %386 = vperm.xlu0 %572, %v371_v22  }
 0x367   :  { %v368_v24 = vsub.f32 2.0, %v366_v23 }
 0x369   :  { %v370_v25 = vmul.f32 %v368_v24, %v364_v21 }
 0x36a   :  { %573 = vset.pattern.permute.xlu1 %v651_v26  ;;  %581 = vset.pattern.permute.xlu0 %v652_v27 }
 0x36b   :  { %v372_v28 = vmul.f32 %v588_v5, %v370_v25  ;;  %406 = vperm.xlu1 %573, %v371_v22  }
 0x36d   :  { %470 = vperm.xlu0 %581, %v372_v28  }
 0x36f   :  { %574 = vset.pattern.permute.xlu1 %v653_v29 }
 0x370   :  { %426 = vperm.xlu1 %574, %v371_v22  }
 0x371   :  { %583 = vset.pattern.permute.xlu0 %v650_v8 }
 0x372   :  { %380 = vperm.xlu0 %583, %v372_v28  }
 0x374   :  { %575 = vset.pattern.permute.xlu1 %v654_v30 }
 0x375   :  { %446 = vperm.xlu1 %575, %v371_v22  }
 0x376   :  { %584 = vset.pattern.permute.xlu0 %v655_v31 }
 0x379   :  { %576 = vset.pattern.permute.xlu1 %v652_v27 }
 0x37a   :  { %466 = vperm.xlu1 %576, %v371_v22  }
 0x37e   :  { %577 = vset.pattern.permute.xlu1 %v649_v7 }
 0x37f   :  { %390 = vperm.xlu1 %577, %v372_v28  }
 0x383   :  { %578 = vset.pattern.permute.xlu1 %v651_v26 }
 0x384   :  { %410 = vperm.xlu1 %578, %v372_v28  }
 0x388   :  { %579 = vset.pattern.permute.xlu1 %v653_v29 }
 0x389   :  { %430 = vperm.xlu1 %579, %v372_v28  }
 0x38d   :  { %580 = vset.pattern.permute.xlu1 %v654_v30 }
 0x38e   :  { %450 = vperm.xlu1 %580, %v372_v28  }
 0x392   :  { %582 = vset.pattern.permute.xlu1 %v655_v31 }
 0x393   :  { %486 = vperm.xlu1 %582, %v371_v22  }
 0x397   :  { %490 = vperm.xlu1 %582, %v372_v28  }
 0x3e5   :  { %v376_v32 = vpop.permute.xlu1 %375  ;;  %v387_v33 = vpop.permute.xlu0 %386 }
 0x3e6   :  { %v393_v34 = vmul.f32 %v387_v33, %v703_v47  ;;  %v383_v1 = vmul.f32 %v376_v32, %v703_v47 }
 0x3e8   :  { %397 = vrot.lane.b32.xlu1 %v393_v34, %s656_s8 }
 0x3ea   :  { %v407_v35 = vpop.permute.xlu1 %406 }
 0x3eb   :  { %v413_v36 = vmul.f32 %v407_v35, %v703_v47 }
 0x3ec   :  { %v471_v53 = vpop.permute.xlu0 %470 }
 0x3ed   :  { %417 = vrot.lane.b32.xlu0 %v413_v36, %s657_s9  ;;  %v474_v54 = vmul.f32 %v471_v53, %v707_v50 }
 0x3ef   :  { %v427_v37 = vpop.permute.xlu1 %426 }
 0x3f0   :  { %v433_v38 = vmul.f32 %v427_v37, %v703_v47 }
 0x3f1   :  { %v381_v59 = vpop.permute.xlu0 %380 }
 0x3f2   :  { %437 = vrot.lane.b32.xlu0 %v433_v38, %s658_s10  ;;  %v384_v5 = vmul.f32 %v381_v59, %v707_v50 }
 0x3f4   :  { %v447_v39 = vpop.permute.xlu1 %446 }
 0x3f5   :  { %v453_v40 = vmul.f32 %v447_v39, %v703_v47 }
 0x3f7   :  { %457 = vrot.lane.b32.xlu0 %v453_v40, %s659_s11 }
 0x3f9   :  { %v467_v41 = vpop.permute.xlu1 %466 }
 0x3fa   :  { %v473_v42 = vmul.f32 %v467_v41, %v703_v47 }
 0x3fc   :  { %477 = vrot.lane.b32.xlu0 %v473_v42, %s660_s12 }
 0x3fe   :  { %v391_v43 = vpop.permute.xlu1 %390 }
 0x3ff   :  { %v394_v44 = vmul.f32 %v391_v43, %v707_v50 }
 0x401   :  { %399 = vrot.lane.b32.xlu1 %v394_v44, %s656_s8 }
 0x403   :  { %v411_v45 = vpop.permute.xlu1 %410 }
 0x404   :  { %v414_v46 = vmul.f32 %v411_v45, %v707_v50 }
 0x406   :  { %419 = vrot.lane.b32.xlu1 %v414_v46, %s657_s9 }
 0x408   :  { %v431_v48 = vpop.permute.xlu1 %430 }
 0x409   :  { %v434_v49 = vmul.f32 %v431_v48, %v707_v50 }
 0x40b   :  { %439 = vrot.lane.b32.xlu1 %v434_v49, %s658_s10 }
 0x40d   :  { %v451_v51 = vpop.permute.xlu1 %450 }
 0x40e   :  { %v454_v52 = vmul.f32 %v451_v51, %v707_v50 }
 0x410   :  { %459 = vrot.lane.b32.xlu1 %v454_v52, %s659_s11 }
 0x412   :  { %v487_v55 = vpop.permute.xlu1 %486 }
 0x413   :  { %v493_v56 = vmul.f32 %v487_v55, %v703_v47 }
 0x414   :  { %479 = vrot.lane.b32.xlu1 %v474_v54, %s660_s12 }
 0x415   :  { %497 = vrot.lane.b32.xlu0 %v493_v56, %s661_s13 }
 0x416   :  { %v491_v57 = vpop.permute.xlu1 %490 }
 0x417   :  { %v494_v58 = vmul.f32 %v491_v57, %v707_v50 }
 0x419   :  { %499 = vrot.lane.b32.xlu1 %v494_v58, %s661_s13 }
 0x45a   :  { %v398_v60 = vpop.permute.xlu1 %397 }
 0x45b   :  { %v403_v4 = vadd.f32 %v398_v60, %v383_v1 }
 0x45f   :  { %v418_v61 = vpop.permute.xlu0 %417 }
 0x460   :  { %v423_v6 = vadd.f32 %v418_v61, %v403_v4 }
 0x464   :  { %v438_v63 = vpop.permute.xlu0 %437 }
 0x465   :  { %v443_v7 = vadd.f32 %v438_v63, %v423_v6 }
 0x469   :  { %v458_v2 = vpop.permute.xlu0 %457 }
 0x46a   :  { %v463_v11 = vadd.f32 %v458_v2, %v443_v7 }
 0x46e   :  { %v478_v10 = vpop.permute.xlu0 %477 }
 0x46f   :  { %v483_v13 = vadd.f32 %v478_v10, %v463_v11 }
 0x473   :  { %v400_v62 = vpop.permute.xlu1 %399 }
 0x474   :  { %v404_v8 = vadd.f32 %v400_v62, %v384_v5 }
 0x478   :  { %v420_v0 = vpop.permute.xlu1 %419 }
 0x479   :  { %v424_v12 = vadd.f32 %v420_v0, %v404_v8 }
 0x47d   :  { %v440_v3 = vpop.permute.xlu1 %439 }
 0x47e   :  { %v444_v14 = vadd.f32 %v440_v3, %v424_v12 }
 0x482   :  { %v460_v9 = vpop.permute.xlu1 %459 }
 0x483   :  { %v464_v17 = vadd.f32 %v460_v9, %v444_v14 }
 0x486   :  { %v480_v15 = vpop.permute.xlu1 %479 }
 0x487   :  { %v498_v16 = vpop.permute.xlu0 %497  ;;  %v484_v47 = vadd.f32 %v480_v15, %v464_v17 }
 0x488   :  { %v503_v18 = vadd.f32 %v498_v16, %v483_v13 }
 0x48a   :  { %506 = vst.msk [vmem:[%s785_s2] sm:$0xff] %vm505_vm8, %v503_v18 }
 0x48b   :  { %v500_v50 = vpop.permute.xlu1 %499 }
 0x48c   :  { %v504_v19 = vadd.f32 %v500_v50, %v484_v47 }
 0x48e   :  { %507 = vst.msk [vmem:[%s785_s2 + $0x8] sm:$0xff] %vm505_vm8, %v504_v19 }
 0x48f   :  { %512 = vsyncpa [#allocation3], 1 }
 0x490   :  { %513 = vsyncpa [#allocation5], 1 }

</bundles_post_ra>
